<compile_context>
chip_gen: v7x
topology: tpu7x:2x2x1
jax: 0.10.0
libtpu: 0.0.40
codegen_flags: <defaults>
</compile_context>

<pallas_src>
import functools

import jax
import jax.numpy as jnp
from jax import lax
from jax.experimental import pallas as pl
from jax.experimental.pallas import tpu as pltpu


def _round_up(x: int, m: int) -> int:
    return ((x + m - 1) // m) * m


# --------------------------------------------------------------------------
# Kernel: one (i, j) output block, K-loop innermost ("arbitrary").
# o_ref's block index is k-invariant -> it is the VMEM-resident accumulator.
# --------------------------------------------------------------------------
def linear_kernel(x_ref, w_ref, b_ref, o_ref):
    # x_ref: (tm, tk) bf16 | w_ref: (tk, tn) bf16 (pre-transposed, stored layout)
    # b_ref: (1, tn)  f32  | o_ref: (tm, tn) f32 (accumulator + output)
    k = pl.program_id(2)

    @pl.when(k == 0)
    def _():
        o_ref[...] = jnp.zeros_like(o_ref)

    o_ref[...] += jnp.dot(
        x_ref[...], w_ref[...], preferred_element_type=jnp.float32
    )

    @pl.when(k == pl.num_programs(2) - 1)
    def _():
        # Bias add kept in f32 (safe on v5e which has no bf16 VPU).
        o_ref[...] += b_ref[...]


# --------------------------------------------------------------------------
# Pallas forward (weight/bias already prepared: padded + bf16 + transposed).
# --------------------------------------------------------------------------
@functools.partial(jax.jit, static_argnames=("tn", "tk", "n_classes"))
def _pallas_forward(x, w_p, b_p, *, tn, tk, n_classes):
    M, K = x.shape
    K_pad, N_pad = w_p.shape

    # Batch tile spans the whole (padded) batch up to 512 so the weight is
    # streamed from HBM only M_pad//tm (usually 1) times.
    tm = min(_round_up(max(M, 1), 16), 512)
    M_pad = _round_up(M, tm)

    # Only the activation is padded/cast per call (tiny vs. the weight).
    x_p = jnp.zeros((M_pad, K_pad), jnp.bfloat16).at[:M, :K].set(
        x.astype(jnp.bfloat16))

    grid = (M_pad // tm, N_pad // tn, K_pad // tk)
    gi, gj, gk = grid

    cost = pl.CostEstimate(
        flops=2 * M_pad * N_pad * K_pad,
        transcendentals=0,
        bytes_accessed=(
            M_pad * K_pad * 2 * gj        # x re-read once per j block
            + K_pad * N_pad * 2 * gi      # weight re-read once per i block
            + N_pad * 4 * gi              # bias
            + M_pad * N_pad * 4           # output written once
        ),
    )

    out = pl.pallas_call(
        linear_kernel,
        out_shape=jax.ShapeDtypeStruct((M_pad, N_pad), jnp.float32),
        grid_spec=pltpu.PrefetchScalarGridSpec(
            num_scalar_prefetch=0,
            grid=grid,
            in_specs=[
                pl.BlockSpec((tm, tk), lambda i, j, k: (i, k)),   # x
                pl.BlockSpec((tk, tn), lambda i, j, k: (k, j)),   # weight (K, N)
                pl.BlockSpec((1, tn), lambda i, j, k: (0, j)),    # bias
            ],
            out_specs=pl.BlockSpec((tm, tn), lambda i, j, k: (i, j)),
        ),
        compiler_params=pltpu.CompilerParams(
            dimension_semantics=("parallel", "parallel", "arbitrary"),
            vmem_limit_bytes=48 * 1024 * 1024,
        ),
        cost_estimate=cost,
    )(x_p, w_p, b_p)

    return out[:M, :n_classes]


@jax.jit
def _dense_forward(x, weight, bias):
    # Small-shape fast path: XLA's fused dot wins below the Pallas launch cost.
    return x @ weight.T + bias


# --------------------------------------------------------------------------
# Factory: prepare parameters once, return a forward closure.
# --------------------------------------------------------------------------
def make_classifier_head(weight, bias, *, use_pallas=None):
    """weight: (num_classes, in_dim) f32, bias: (num_classes,) f32 (torch layout)."""
    N, K = weight.shape

    # ---- tile selection for the weight dims (done once) ----
    tk = min(_round_up(K, 128), 2048)
    n128 = _round_up(N, 128)
    tn = min(n128, 2048)
    # Keep >=2 blocks along the class axis when possible so both v7x
    # TensorCores get work even when the batch fits a single block.
    if n128 >= 256 and n128 // tn < 2:
        tn = max(128, _round_up(n128 // 2, 128))

    # ---- shrink until the double-buffered footprint fits ~40 MiB (v7x-safe) ----
    TM_MAX = 512
    VMEM_BUDGET = 40 * 1024 * 1024

    def footprint(tn_, tk_):
        return 2 * (TM_MAX * tk_ * 2 + tk_ * tn_ * 2 + tn_ * 4 + TM_MAX * tn_ * 4)

    while footprint(tn, tk) > VMEM_BUDGET and (tn > 128 or tk > 128):
        if tk >= tn and tk > 128:
            tk = max(128, _round_up(tk // 2, 128))
        else:
            tn = max(128, _round_up(tn // 2, 128))

    N_pad = _round_up(N, tn)
    K_pad = _round_up(K, tk)

    # ---- one-time parameter preparation (cast + pad + transpose) ----
    w_p = jnp.zeros((K_pad, N_pad), jnp.bfloat16).at[:K, :N].set(
        weight.astype(jnp.bfloat16).T)
    b_p = jnp.zeros((1, N_pad), jnp.float32).at[0, :N].set(
        bias.astype(jnp.float32))
    w_p = jax.device_put(w_p)
    b_p = jax.device_put(b_p)

    def forward(x):
        go_pallas = use_pallas
        if go_pallas is None:
            # Auto: only dispatch to Pallas above a size threshold.
            go_pallas = x.shape[0] * K * N >= (1 << 22)
        if go_pallas:
            return _pallas_forward(x, w_p, b_p, tn=tn, tk=tk, n_classes=N)
        return _dense_forward(x, weight, bias)

    return forward


if __name__ == "__main__":
    in_dim = 128
    num_classes = 10
    B = 8

    key = jax.random.PRNGKey(0)
    kx, kw, kb = jax.random.split(key, 3)

    # Parameter init mimicking nn.Linear's uniform(-1/sqrt(fan_in), 1/sqrt(fan_in)).
    bound = 1.0 / (in_dim ** 0.5)
    weight = jax.random.uniform(kw, (num_classes, in_dim), jnp.float32, -bound, bound)
    bias = jax.random.uniform(kb, (num_classes,), jnp.float32, -bound, bound)
    x = jax.random.normal(kx, (B, in_dim), jnp.float32)

    # Force the Pallas path so the kernel is exercised at this demo shape.
    head = make_classifier_head(weight, bias, use_pallas=True)
    y = jax.block_until_ready(head(x))

    # Reference 1: same bf16-input math in plain JAX (tight tolerance).
    y_ref_bf16 = lax.dot_general(
        x.astype(jnp.bfloat16), weight.astype(jnp.bfloat16),
        dimension_numbers=(((1,), (1,)), ((), ())),
        preferred_element_type=jnp.float32) + bias
    # Reference 2: full f32 torch-Linear math (loose tolerance for bf16 inputs).
    y_ref_f32 = x @ weight.T + bias

    assert y.shape == (B, num_classes)
    assert jnp.allclose(y, y_ref_bf16, atol=1e-3, rtol=1e-3)
    assert jnp.allclose(y, y_ref_f32, atol=2e-2, rtol=2e-2)

    print("KERNEL_OK")
</pallas_src>

<mosaic_0001>
module attributes {stable_mosaic.version = 11 : i64} {
  func.func @linear_kernel(%arg0: i32, %arg1: i32, %arg2: i32, %arg3: memref<16x128xbf16, #tpu.memory_space<vmem>>, %arg4: memref<128x128xbf16, #tpu.memory_space<vmem>>, %arg5: memref<1x128xf32, #tpu.memory_space<vmem>>, %arg6: memref<16x128xf32, #tpu.memory_space<vmem>>) attributes {dimension_semantics = [#tpu.dimension_semantics<parallel>, #tpu.dimension_semantics<parallel>, #tpu.dimension_semantics<arbitrary>], iteration_bounds = array<i64: 1, 1, 1>, scalar_prefetch = 0 : i64, scratch_operands = 0 : i64, tpu.core_type = #tpu.core_type<tc>, window_params = [{transform_indices = @transform_0, window_bounds = array<i64: 16, 128>}, {transform_indices = @transform_1, window_bounds = array<i64: 128, 128>}, {transform_indices = @transform_2, window_bounds = array<i64: 1, 128>}, {transform_indices = @transform_3, window_bounds = array<i64: 16, 128>}]} {
    %c0_i32 = arith.constant 0 : i32
    %0 = arith.cmpi eq, %arg2, %c0_i32 : i32
    %1 = arith.extui %0 : i1 to i32
    %c0_i32_0 = arith.constant 0 : i32
    %2 = arith.cmpi ne, %1, %c0_i32_0 : i32
    scf.if %2 {
      %cst_10 = arith.constant 0.000000e+00 : f32
      %12 = vector.broadcast %cst_10 : f32 to vector<16x128xf32>
      %c0_11 = arith.constant 0 : index
      %c0_12 = arith.constant 0 : index
      %13 = vector.load %arg6[%c0_11, %c0_12] : memref<16x128xf32, #tpu.memory_space<vmem>>, vector<16x128xf32>
      tpu.vector_store %arg6[%c0_11, %c0_12], %12 {strides = array<i32>} : memref<16x128xf32, #tpu.memory_space<vmem>>, vector<16x128xf32>,
    } else {
    }
    %c0 = arith.constant 0 : index
    %c0_1 = arith.constant 0 : index
    %3 = vector.load %arg6[%c0, %c0_1] : memref<16x128xf32, #tpu.memory_space<vmem>>, vector<16x128xf32>
    %c0_2 = arith.constant 0 : index
    %c0_3 = arith.constant 0 : index
    %4 = vector.load %arg3[%c0_2, %c0_3] : memref<16x128xbf16, #tpu.memory_space<vmem>>, vector<16x128xbf16>
    %c0_4 = arith.constant 0 : index
    %c0_5 = arith.constant 0 : index
    %5 = vector.load %arg4[%c0_4, %c0_5] : memref<128x128xbf16, #tpu.memory_space<vmem>>, vector<128x128xbf16>
    %cst = arith.constant dense<0.000000e+00> : vector<16x128xf32>
    %6 = tpu.matmul %4, %5, %cst {dimension_numbers = #tpu.dot_dimension_numbers<[1], [0], [0], [1], [0, 0, 1, 1], [], []>} : vector<16x128xbf16>, vector<128x128xbf16>, vector<16x128xf32> -> vector<16x128xf32>
    %7 = arith.addf %3, %6 : vector<16x128xf32>
    %c0_6 = arith.constant 0 : index
    %c0_7 = arith.constant 0 : index
    %8 = vector.load %arg6[%c0_6, %c0_7] : memref<16x128xf32, #tpu.memory_space<vmem>>, vector<16x128xf32>
    tpu.vector_store %arg6[%c0_6, %c0_7], %7 {strides = array<i32>} : memref<16x128xf32, #tpu.memory_space<vmem>>, vector<16x128xf32>,
    %c0_i32_8 = arith.constant 0 : i32
    %9 = arith.cmpi eq, %arg2, %c0_i32_8 : i32
    %10 = arith.extui %9 : i1 to i32
    %c0_i32_9 = arith.constant 0 : i32
    %11 = arith.cmpi ne, %10, %c0_i32_9 : i32
    scf.if %11 {
      %c0_10 = arith.constant 0 : index
      %c0_11 = arith.constant 0 : index
      %12 = vector.load %arg6[%c0_10, %c0_11] : memref<16x128xf32, #tpu.memory_space<vmem>>, vector<16x128xf32>
      %c0_12 = arith.constant 0 : index
      %c0_13 = arith.constant 0 : index
      %13 = vector.load %arg5[%c0_12, %c0_13] : memref<1x128xf32, #tpu.memory_space<vmem>>, vector<1x128xf32>
      %14 = vector.broadcast %13 : vector<1x128xf32> to vector<16x128xf32>
      %15 = arith.addf %12, %14 : vector<16x128xf32>
      %c0_14 = arith.constant 0 : index
      %c0_15 = arith.constant 0 : index
      %16 = vector.load %arg6[%c0_14, %c0_15] : memref<16x128xf32, #tpu.memory_space<vmem>>, vector<16x128xf32>
      tpu.vector_store %arg6[%c0_14, %c0_15], %15 {strides = array<i32>} : memref<16x128xf32, #tpu.memory_space<vmem>>, vector<16x128xf32>,
    } else {
    }
    return
  }
  func.func @transform_0(%arg0: i32, %arg1: i32, %arg2: i32) -> (i32, i32) {
    %c0_i32 = arith.constant 0 : i32
    return %arg0, %arg2 : i32, i32
  }
  func.func @transform_1(%arg0: i32, %arg1: i32, %arg2: i32) -> (i32, i32) {
    %c0_i32 = arith.constant 0 : i32
    return %arg2, %arg1 : i32, i32
  }
  func.func @transform_2(%arg0: i32, %arg1: i32, %arg2: i32) -> (i32, i32) {
    %c0_i32 = arith.constant 0 : i32
    %c0_i32_0 = arith.constant 0 : i32
    return %c0_i32, %arg1 : i32, i32
  }
  func.func @transform_3(%arg0: i32, %arg1: i32, %arg2: i32) -> (i32, i32) {
    %c0_i32 = arith.constant 0 : i32
    return %arg0, %arg1 : i32, i32
  }
}

</mosaic_0001>

<bundles_post_ra>
// kernel: _pallas_forward.1
= control target key start
LH: loop header
LB: loop body
LE: loop exit
PB: predicated region body
PF: predicated region fallthrough
CT: control target
= control target key end

     0   :  { %8 = vsyncpa [#allocation3], 0  ;;  %s252_s12 = smov [#allocation2]   ;;  %s301_s0 = inlined_call_operand.vmem [shape: bf16[16,128], index: 0, kind: input, shape index: {}]   ;;  %s302_s1 = inlined_call_operand.hbm [shape: bf16[128,128], index: 1, kind: input, shape index: {}]   ;;  %s303_s2 = inlined_call_operand.vmem [shape: f32[1,128], index: 2, kind: input, shape index: {}]   ;;  %s304_s3 = inlined_call_operand.vmem [shape: f32[16,128], index: 3, kind: output, shape index: {}]  }
   0x1   :  { %s16_s13 = sshll.u32 %s252_s12, 4  ;;  %s228_s16 = scalar_lea.hbm %s302_s1, 1024  ;;  %s17_s13 = int_to_ptr.vmem [resolvable:$true] %s16_s13 }
   0x2   :  { %p229_p0 = scmp.ne.s32.totalorder %s302_s1, %s228_s16  ;;  %p232_p1 = scmp.lt.u32.totalorder %s228_s16, %s302_s1 }
   0x4   :  { %p234_p2 = pnand %p232_p1, %p229_p0 }
   0x6   :  { %237 = shalt.err (!%p234_p2)
}
   0x7   :  { %s238_s21 = scalar_lea.vmem %s17_s13, 1024  ;;  %p243_p4 = scmp.lt.s32.totalorder %s17_s13, %s17_s13 }
   0x8   :  { %p239_p3 = scmp.ne.s32.totalorder %s17_s13, %s238_s21  ;;  %p244_p5 = scmp.lt.s32.totalorder %s238_s21, %s238_s21 }
   0xa   :  { %p245_p6 = por %p244_p5, %p243_p4 }
   0xc   :  { %p246_p7 = pnand %p245_p6, %p239_p3 }
   0xe   :  { %249 = shalt.err (!%p246_p7)
}
   0xf   :  { %s253_s22 = smov 64   ;;  %s254_s23 = smov 4  }
  0x10   :  { %22 = dma.hbm_to_vmem [thread:$0]  %s302_s1, 1024, %s17_s13, [#allocation3], %s253_s22, %s253_s22, %s254_s23  }
  0x11   :  { %250 = dma.done.wait [#allocation3], 1024  }
  0x12   :  { %251 = vsyncadd [#allocation3], 4294966272  ;;  %v255_v0 = vmov 0.0   ;;  %vm256_vm0 = vmmov 0   ;;  %v219_v1 = vld [vmem:[#allocation2] sm:$0xff]   ;;  %v220_v2 = vld [vmem:[#allocation2 + $0x8] sm:$0xff]  }
  0x13   :  { %194 = vmatprep.subr.bf16.mxu0 %v255_v0  ;;  %210 = vmatprep.mubr.msk.bf16.mxu0 %vm256_vm0, %v255_v0  ;;  %v221_v3 = vld [vmem:[#allocation2 + $0x10] sm:$0xff]   ;;  %v222_v4 = vld [vmem:[#allocation2 + $0x18] sm:$0xff]   ;;  %v223_v5 = vld [vmem:[#allocation2 + $0x20] sm:$0xff]  }
  0x14   :  { %195 = vmatpush3.bf16.msra.mxu0 %v219_v1  ;;  %v224_v6 = vld [vmem:[#allocation2 + $0x28] sm:$0xff]   ;;  %v225_v7 = vld [vmem:[#allocation2 + $0x30] sm:$0xff]   ;;  %v226_v8 = vld [vmem:[#allocation2 + $0x38] sm:$0xff]  }
  0x15   :  { %196 = vmatprep.subr.bf16.mxu0 %v255_v0  ;;  %v227_v9 = vld [vmem:[%s301_s0] sm:$0xff]  }
  0x16   :  { %v184_v11 = vld [vmem:[%s303_s2] ss:$0 sm:$0xff] }
  0x18   :  { %197 = vmatpush3.bf16.msra.mxu0 %v220_v2 }
  0x19   :  { %198 = vmatprep.subr.bf16.mxu0 %v255_v0 }
  0x1c   :  { %199 = vmatpush3.bf16.msra.mxu0 %v221_v3 }
  0x1d   :  { %200 = vmatprep.subr.bf16.mxu0 %v255_v0 }
  0x20   :  { %201 = vmatpush3.bf16.msra.mxu0 %v222_v4 }
  0x21   :  { %202 = vmatprep.subr.bf16.mxu0 %v255_v0 }
  0x24   :  { %203 = vmatpush3.bf16.msra.mxu0 %v223_v5 }
  0x25   :  { %204 = vmatprep.subr.bf16.mxu0 %v255_v0 }
  0x28   :  { %205 = vmatpush3.bf16.msra.mxu0 %v224_v6 }
  0x29   :  { %206 = vmatprep.subr.bf16.mxu0 %v255_v0 }
  0x2c   :  { %207 = vmatpush3.bf16.msra.mxu0 %v225_v7 }
  0x2d   :  { %208 = vmatprep.subr.bf16.mxu0 %v255_v0 }
  0x30   :  { %209 = vmatpush3.bf16.msra.mxu0 %v226_v8 }
  0x33   :  { %211 = vmatmul.mubr.bf16.vlgmr.msra.gmra.mrb[0].mxu0 %v227_v9 }
 0x106   :  { %v143_v10 = vpop.f32.mrb[0].mxu0 }
 0x107   :  { %v212_v12 = vpop.f32.mrb[1].mxu0  ;;  %v166_v14 = vadd.f32 %v184_v11, %v143_v10 }
 0x108   :  { %v146_v13 = vpop.f32.mrb[2].mxu0 }
 0x109   :  { %v213_v15 = vpop.f32.mrb[3].mxu0  ;;  %168 = vst [vmem:[%s304_s3] sm:$0xff] %v166_v14  ;;  %v167_v16 = vadd.f32 %v184_v11, %v146_v13 }
 0x10b   :  { %169 = vst [vmem:[%s304_s3 + $0x8] sm:$0xff] %v167_v16 }
 0x10c   :  { %174 = vsyncpa [#allocation3], 1 }

</bundles_post_ra>
